<compile_context>
chip_gen: v5e
topology: v5e:2x2
jax: 0.10.0
libtpu: 0.0.40
codegen_flags: <defaults>
</compile_context>

<pallas_src>
import functools

import jax
import jax.numpy as jnp
from jax.experimental import pallas as pl
from jax.experimental.pallas import tpu as pltpu


_LANES = 128
_SUBLANES = 8
_VMEM_SPEC = pl.BlockSpec(memory_space=pltpu.MemorySpace.VMEM)


def _round_up(x, m):
    return (x + m - 1) // m * m


# ------------------------------ fused kernel --------------------------------


def _generator_kernel(layout, z_ref, p_ref, out_ref):
    """Fused forward: num_layers GRU cells (seq_len=1, h0=0) + final Linear.

    z_ref : (B, input_dim) f32
    p_ref : (total_rows, lanes) f32 packed parameter slab; static row offsets
            per layer are carried in `layout` (plain Python ints).
    """
    H = layout["H"]
    O = layout["O"]

    x = z_ref[...]
    for L in layout["layers"]:
        w_row, d_in, b_row = L["w_row"], L["d_in"], L["bias_row"]
        w = p_ref[w_row:w_row + d_in, :]            # (D_in, lanes); lanes>=3H zero
        b = p_ref[b_row:b_row + 1, :]               # (1, lanes)  [b_r|b_z|b_in|b_hn]
        # One MXU pass for all three gates (lanes 0:3H); lanes 3H:4H carry b_hn
        # (weight columns there are zero, so g[:, 3H:4H] == broadcast(b_hn)).
        g = jnp.dot(x, w, preferred_element_type=jnp.float32) + b
        r = jax.nn.sigmoid(g[:, 0:H])
        zg = jax.nn.sigmoid(g[:, H:2 * H])
        if layout["packed_hn"]:
            hn = g[:, 3 * H:4 * H]
        else:
            hn = p_ref[b_row + 1:b_row + 2, 0:H]    # (1, H) broadcast
        n = jnp.tanh(g[:, 2 * H:3 * H] + r * hn)
        x = (1.0 - zg) * n                          # + zg*h0, but h0 == 0

    fc = layout["fc"]
    w_fc = p_ref[fc["w_row"]:fc["w_row"] + H, :]    # (H, lanes); lanes>=O zero
    b_fc = p_ref[fc["bias_row"]:fc["bias_row"] + 1, 0:O]
    y = jnp.dot(x, w_fc, preferred_element_type=jnp.float32)
    out_ref[...] = y[:, 0:O] + b_fc


# ------------------------------ jitted wrapper -------------------------------


def make_generator_forward(layout):
    """Builds a jitted forward; `layout` (static Python ints) is closed over."""
    kernel = functools.partial(_generator_kernel, layout)

    @jax.jit
    def forward(packed_params, z):
        B = z.shape[0]
        return pl.pallas_call(
            kernel,
            out_shape=jax.ShapeDtypeStruct((B, layout["O"]), jnp.float32),
            in_specs=[_VMEM_SPEC, _VMEM_SPEC],
            out_specs=_VMEM_SPEC,
        )(z.astype(jnp.float32), packed_params)

    return forward


# --------------------------- parameter handling ------------------------------


def init_generator_params(key, input_dim, hidden_dim, output_dim, num_layers):
    """PyTorch-style uniform(-1/sqrt(H), 1/sqrt(H)) init, raw PyTorch layout."""
    params = {"gru": [], "fc": None}
    bound = 1.0 / jnp.sqrt(jnp.float32(hidden_dim))

    def u(k, shape):
        return jax.random.uniform(k, shape, jnp.float32, -bound, bound)

    for layer in range(num_layers):
        d_in = input_dim if layer == 0 else hidden_dim
        key, k0, k1, k2, k3 = jax.random.split(key, 5)
        params["gru"].append(
            dict(
                w_ih=u(k0, (3 * hidden_dim, d_in)),        # PyTorch (3H, D_in)
                w_hh=u(k1, (3 * hidden_dim, hidden_dim)),  # PyTorch (3H, H)
                b_ih=u(k2, (3 * hidden_dim,)),
                b_hh=u(k3, (3 * hidden_dim,)),
            )
        )

    key, k0, k1 = jax.random.split(key, 3)
    params["fc"] = dict(
        w=jax.random.uniform(k0, (output_dim, hidden_dim), jnp.float32,
                             -bound, bound),
        b=jax.random.uniform(k1, (output_dim,), jnp.float32, -bound, bound),
    )
    return params


def prepare_kernel_params(raw):
    """One-time prep: pack ALL weights/biases into one (rows, 128) f32 slab.

    Per GRU layer:
      rows [w_row, w_row+D_in)      : W_ih^T, gates [r|z|n] in lanes 0:3H
      row  bias_row                 : lanes 0:H   = b_ih_r + b_hh_r  (folded)
                                      lanes H:2H  = b_ih_z + b_hh_z  (folded)
                                      lanes 2H:3H = b_ih_n
                                      lanes 3H:4H = b_hh_n  (if 4H <= lanes)
      row  bias_row+1 (fallback)    : lanes 0:H   = b_hh_n  (if 4H > lanes)
    FC:
      rows [w_row, w_row+H)         : W_fc^T in lanes 0:O
      row  bias_row                 : b_fc in lanes 0:O
    All regions start on 8-row (sublane) boundaries; unused entries are zero.
    """
    H = raw["gru"][0]["w_hh"].shape[1]
    O = raw["fc"]["w"].shape[0]
    lanes = _round_up(max(3 * H, O), _LANES)
    packed_hn = (4 * H <= lanes)

    layout = {"H": H, "O": O, "lanes": lanes, "packed_hn": packed_hn,
              "layers": [], "fc": None}
    blocks = []
    row = 0

    for lp in raw["gru"]:
        w_ih = lp["w_ih"].astype(jnp.float32)            # (3H, D_in)
        b_ih = lp["b_ih"].astype(jnp.float32)
        b_hh = lp["b_hh"].astype(jnp.float32)
        d_in = w_ih.shape[1]
        d_in_pad = _round_up(d_in, _SUBLANES)

        w_block = jnp.zeros((d_in_pad, lanes), jnp.float32)
        w_block = w_block.at[:d_in, :3 * H].set(w_ih.T)

        b_block = jnp.zeros((_SUBLANES, lanes), jnp.float32)
        b_block = b_block.at[0, :2 * H].set(b_ih[:2 * H] + b_hh[:2 * H])  # r,z folded
        b_block = b_block.at[0, 2 * H:3 * H].set(b_ih[2 * H:3 * H])       # b_in
        if packed_hn:
            b_block = b_block.at[0, 3 * H:4 * H].set(b_hh[2 * H:3 * H])   # b_hn
        else:
            b_block = b_block.at[1, :H].set(b_hh[2 * H:3 * H])

        layout["layers"].append(dict(w_row=row, d_in=d_in,
                                     bias_row=row + d_in_pad))
        blocks += [w_block, b_block]
        row += d_in_pad + _SUBLANES

    h_pad = _round_up(H, _SUBLANES)
    w_fc_block = jnp.zeros((h_pad, lanes), jnp.float32)
    w_fc_block = w_fc_block.at[:H, :O].set(raw["fc"]["w"].T.astype(jnp.float32))
    b_fc_block = jnp.zeros((_SUBLANES, lanes), jnp.float32)
    b_fc_block = b_fc_block.at[0, :O].set(raw["fc"]["b"].astype(jnp.float32))
    layout["fc"] = dict(w_row=row, bias_row=row + h_pad)
    blocks += [w_fc_block, b_fc_block]
    row += h_pad + _SUBLANES

    layout["total_rows"] = row
    packed = jax.device_put(jnp.concatenate(blocks, axis=0))
    return packed, layout


# ----------------------- pure-JAX reference (sanity) -------------------------


def generator_forward_ref(raw, z):
    B = z.shape[0]
    H = raw["gru"][0]["w_hh"].shape[1]
    hp = jax.lax.Precision.HIGHEST
    x = z.astype(jnp.float32)
    for lp in raw["gru"]:
        h = jnp.zeros((B, H), jnp.float32)
        gi = jnp.dot(x, lp["w_ih"].T, precision=hp) + lp["b_ih"]
        gh = jnp.dot(h, lp["w_hh"].T, precision=hp) + lp["b_hh"]
        r = jax.nn.sigmoid(gi[:, :H] + gh[:, :H])
        zg = jax.nn.sigmoid(gi[:, H:2 * H] + gh[:, H:2 * H])
        n = jnp.tanh(gi[:, 2 * H:] + r * gh[:, 2 * H:])
        x = (1.0 - zg) * n + zg * h
    return jnp.dot(x, raw["fc"]["w"].T, precision=hp) + raw["fc"]["b"]


# --------------------------------- main ---------------------------------------

if __name__ == "__main__":
    key = jax.random.PRNGKey(0)

    batch = 8
    input_dim = 16
    hidden_dim = 32
    output_dim = 8
    num_layers = 2

    key, pkey, zkey = jax.random.split(key, 3)
    raw_params = init_generator_params(pkey, input_dim, hidden_dim, output_dim,
                                       num_layers)
    packed_params, layout = prepare_kernel_params(raw_params)
    forward = make_generator_forward(layout)

    z = jax.random.normal(zkey, (batch, input_dim), jnp.float32)

    out = forward(packed_params, z)
    out = jax.block_until_ready(out)

    ref = generator_forward_ref(raw_params, z)
    assert out.shape == (batch, output_dim)
    assert jnp.allclose(out, ref, atol=1e-3, rtol=1e-3), (
        "max abs err %g" % float(jnp.max(jnp.abs(out - ref))))

    print("KERNEL_OK")
</pallas_src>

<mosaic_0001>
module attributes {stable_mosaic.version = 11 : i64} {
  func.func @_generator_kernel(%arg0: memref<8x16xf32, #tpu.memory_space<vmem>>, %arg1: memref<104x128xf32, #tpu.memory_space<vmem>>, %arg2: memref<8x8xf32, #tpu.memory_space<vmem>>) attributes {dimension_semantics = [], scalar_prefetch = 0 : i64, scratch_operands = 0 : i64, tpu.core_type = #tpu.core_type<tc>} {
    %c0 = arith.constant 0 : index
    %c0_0 = arith.constant 0 : index
    %0 = vector.load %arg0[%c0, %c0_0] : memref<8x16xf32, #tpu.memory_space<vmem>>, vector<8x16xf32>
    %c0_1 = arith.constant 0 : index
    %c0_2 = arith.constant 0 : index
    %1 = vector.load %arg1[%c0_1, %c0_2] : memref<104x128xf32, #tpu.memory_space<vmem>>, vector<16x128xf32>
    %c16 = arith.constant 16 : index
    %c0_3 = arith.constant 0 : index
    %2 = vector.load %arg1[%c16, %c0_3] : memref<104x128xf32, #tpu.memory_space<vmem>>, vector<1x128xf32>
    %cst = arith.constant dense<0.000000e+00> : vector<8x128xf32>
    %3 = tpu.matmul %0, %1, %cst {dimension_numbers = #tpu.dot_dimension_numbers<[1], [0], [0], [1], [0, 0, 1, 1], [], []>} : vector<8x16xf32>, vector<16x128xf32>, vector<8x128xf32> -> vector<8x128xf32>
    %4 = vector.broadcast %2 : vector<1x128xf32> to vector<8x128xf32>
    %5 = arith.addf %3, %4 : vector<8x128xf32>
    %6 = vector.extract_strided_slice %5 {offsets = [0, 0], sizes = [8, 32], strides = [1, 1]} : vector<8x128xf32> to vector<8x32xf32>
    %7 = arith.negf %6 : vector<8x32xf32>
    %8 = math.exp %7 : vector<8x32xf32>
    %cst_4 = arith.constant 1.000000e+00 : f32
    %9 = vector.broadcast %cst_4 : f32 to vector<8x32xf32>
    %10 = arith.addf %9, %8 : vector<8x32xf32>
    %11 = arith.divf %9, %10 : vector<8x32xf32>
    %12 = vector.extract_strided_slice %5 {offsets = [0, 32], sizes = [8, 32], strides = [1, 1]} : vector<8x128xf32> to vector<8x32xf32>
    %13 = arith.negf %12 : vector<8x32xf32>
    %14 = math.exp %13 : vector<8x32xf32>
    %cst_5 = arith.constant 1.000000e+00 : f32
    %15 = vector.broadcast %cst_5 : f32 to vector<8x32xf32>
    %16 = arith.addf %15, %14 : vector<8x32xf32>
    %17 = arith.divf %15, %16 : vector<8x32xf32>
    %18 = vector.extract_strided_slice %5 {offsets = [0, 96], sizes = [8, 32], strides = [1, 1]} : vector<8x128xf32> to vector<8x32xf32>
    %19 = vector.extract_strided_slice %5 {offsets = [0, 64], sizes = [8, 32], strides = [1, 1]} : vector<8x128xf32> to vector<8x32xf32>
    %20 = arith.mulf %11, %18 : vector<8x32xf32>
    %21 = arith.addf %19, %20 : vector<8x32xf32>
    %22 = math.tanh %21 : vector<8x32xf32>
    %cst_6 = arith.constant 1.000000e+00 : f32
    %23 = vector.broadcast %cst_6 : f32 to vector<8x32xf32>
    %24 = arith.subf %23, %17 : vector<8x32xf32>
    %25 = arith.mulf %24, %22 : vector<8x32xf32>
    %c24 = arith.constant 24 : index
    %c0_7 = arith.constant 0 : index
    %26 = vector.load %arg1[%c24, %c0_7] : memref<104x128xf32, #tpu.memory_space<vmem>>, vector<32x128xf32>
    %c56 = arith.constant 56 : index
    %c0_8 = arith.constant 0 : index
    %27 = vector.load %arg1[%c56, %c0_8] : memref<104x128xf32, #tpu.memory_space<vmem>>, vector<1x128xf32>
    %cst_9 = arith.constant dense<0.000000e+00> : vector<8x128xf32>
    %28 = tpu.matmul %25, %26, %cst_9 {dimension_numbers = #tpu.dot_dimension_numbers<[1], [0], [0], [1], [0, 0, 1, 1], [], []>} : vector<8x32xf32>, vector<32x128xf32>, vector<8x128xf32> -> vector<8x128xf32>
    %29 = vector.broadcast %27 : vector<1x128xf32> to vector<8x128xf32>
    %30 = arith.addf %28, %29 : vector<8x128xf32>
    %31 = vector.extract_strided_slice %30 {offsets = [0, 0], sizes = [8, 32], strides = [1, 1]} : vector<8x128xf32> to vector<8x32xf32>
    %32 = arith.negf %31 : vector<8x32xf32>
    %33 = math.exp %32 : vector<8x32xf32>
    %cst_10 = arith.constant 1.000000e+00 : f32
    %34 = vector.broadcast %cst_10 : f32 to vector<8x32xf32>
    %35 = arith.addf %34, %33 : vector<8x32xf32>
    %36 = arith.divf %34, %35 : vector<8x32xf32>
    %37 = vector.extract_strided_slice %30 {offsets = [0, 32], sizes = [8, 32], strides = [1, 1]} : vector<8x128xf32> to vector<8x32xf32>
    %38 = arith.negf %37 : vector<8x32xf32>
    %39 = math.exp %38 : vector<8x32xf32>
    %cst_11 = arith.constant 1.000000e+00 : f32
    %40 = vector.broadcast %cst_11 : f32 to vector<8x32xf32>
    %41 = arith.addf %40, %39 : vector<8x32xf32>
    %42 = arith.divf %40, %41 : vector<8x32xf32>
    %43 = vector.extract_strided_slice %30 {offsets = [0, 96], sizes = [8, 32], strides = [1, 1]} : vector<8x128xf32> to vector<8x32xf32>
    %44 = vector.extract_strided_slice %30 {offsets = [0, 64], sizes = [8, 32], strides = [1, 1]} : vector<8x128xf32> to vector<8x32xf32>
    %45 = arith.mulf %36, %43 : vector<8x32xf32>
    %46 = arith.addf %44, %45 : vector<8x32xf32>
    %47 = math.tanh %46 : vector<8x32xf32>
    %cst_12 = arith.constant 1.000000e+00 : f32
    %48 = vector.broadcast %cst_12 : f32 to vector<8x32xf32>
    %49 = arith.subf %48, %42 : vector<8x32xf32>
    %50 = arith.mulf %49, %47 : vector<8x32xf32>
    %c64 = arith.constant 64 : index
    %c0_13 = arith.constant 0 : index
    %51 = vector.load %arg1[%c64, %c0_13] : memref<104x128xf32, #tpu.memory_space<vmem>>, vector<32x128xf32>
    %c96 = arith.constant 96 : index
    %c0_14 = arith.constant 0 : index
    %52 = vector.load %arg1[%c96, %c0_14] : memref<104x128xf32, #tpu.memory_space<vmem>>, vector<1x8xf32>
    %cst_15 = arith.constant dense<0.000000e+00> : vector<8x128xf32>
    %53 = tpu.matmul %50, %51, %cst_15 {dimension_numbers = #tpu.dot_dimension_numbers<[1], [0], [0], [1], [0, 0, 1, 1], [], []>} : vector<8x32xf32>, vector<32x128xf32>, vector<8x128xf32> -> vector<8x128xf32>
    %54 = vector.extract_strided_slice %53 {offsets = [0, 0], sizes = [8, 8], strides = [1, 1]} : vector<8x128xf32> to vector<8x8xf32>
    %55 = vector.broadcast %52 : vector<1x8xf32> to vector<8x8xf32>
    %56 = arith.addf %54, %55 : vector<8x8xf32>
    %c0_16 = arith.constant 0 : index
    %c0_17 = arith.constant 0 : index
    %57 = vector.load %arg2[%c0_16, %c0_17] : memref<8x8xf32, #tpu.memory_space<vmem>>, vector<8x8xf32>
    tpu.vector_store %arg2[%c0_16, %c0_17], %56 {strides = array<i32>} : memref<8x8xf32, #tpu.memory_space<vmem>>, vector<8x8xf32>,
    return
  }
}

</mosaic_0001>

<bundles_post_ra>
// kernel: forward.1
= control target key start
LH: loop header
LB: loop body
LE: loop exit
PB: predicated region body
PF: predicated region fallthrough
CT: control target
= control target key end

     0   :  { %7 = vsyncpa [#allocation3], 0  ;;  %s375_s0 = inlined_call_operand.hbm [shape: f32[8,16], index: 0, kind: input, shape index: {}]   ;;  %s376_s1 = inlined_call_operand.hbm [shape: f32[104,128], index: 1, kind: input, shape index: {}]   ;;  %s377_s2 = inlined_call_operand.hbm [shape: f32[8,8], index: 2, kind: output, shape index: {}]  }
   0x1   :  { %8 = vsyncpa [#allocation6], 0 }
   0x2   :  { %9 = vsyncpa [#allocation4], 0  ;;  %s15_s11 = sshll.u32 %s375_s0, 4  ;;  %s333_s12 = smov [#allocation2]   ;;  %s16_s11 = int_to_ptr.hbm [resolvable:$true] %s15_s11 }
   0x3   :  { %s17_s13 = sshll.u32 %s333_s12, 4  ;;  %s25_s16 = sshll.u32 %s376_s1, 4  ;;  %s18_s13 = int_to_ptr.vmem [resolvable:$true] %s17_s13  ;;  %s26_s16 = int_to_ptr.hbm [resolvable:$true] %s25_s16 }
   0x4   :  { %20 = dma.hbm_to_vmem [thread:$0]  %s16_s11, 128, %s18_s13, [#allocation3]  }
   0x5   :  { %s334_s17 = smov [#allocation5]   ;;  %s335_s19 = smov 128  }
   0x6   :  { %s27_s18 = sshll.u32 %s334_s17, 4  ;;  %s336_s20 = smov 8   ;;  %s28_s18 = int_to_ptr.vmem [resolvable:$true] %s27_s18 }
   0x7   :  { %33 = dma.hbm_to_vmem [thread:$0]  %s26_s16, 1664, %s28_s18, [#allocation6], %s335_s19, %s335_s19, %s336_s20  }
   0x8   :  { %327 = dma.done.wait [#allocation3], 128  }
   0x9   :  { %328 = vsyncadd [#allocation3], 4294967168 }
   0xa   :  { %329 = dma.done.wait [#allocation6], 1664  }
   0xb   :  { %330 = vsyncadd [#allocation6], 4294965632  ;;  %v44_v0 = vld [vmem:[#allocation5 + $0x8] sm:$0xff]  ;;  %v43_v1 = vld [vmem:[#allocation5] sm:$0xff]  ;;  %vm47_vm0 = vcmask 130048   ;;  %s337_s0 = smov 32  }
   0xc   :  { %65 = vmatpush.msra.mxu0 %v44_v0  ;;  %v42_v2 = vld [vmem:[#allocation2] sm:$0xff]  ;;  %v240_v3 = vld [vmem:[#allocation5 + $0x10] ss:$0 sm:$0xff]  ;;  %s338_s1 = smov 64   ;;  %s339_s21 = smov 96   ;;  %v109_v25 = vld [vmem:[#allocation5 + $0x28] sm:$0xff] }
   0xd   :  { %v110_v24 = vld [vmem:[#allocation5 + $0x30] sm:$0xff]  ;;  %v108_v26 = vld [vmem:[#allocation5 + $0x20] sm:$0xff]  ;;  %v107_v27 = vld [vmem:[#allocation5 + $0x18] sm:$0xff]  ;;  %vm116_vm5 = vcmask 261120   ;;  %s340_s22 = smov [#allocation7]   ;;  %s216_s26 = sshll.u32 %s377_s2, 4  ;;  %s217_s26 = int_to_ptr.hbm [resolvable:$true] %s216_s26 }
   0xe   :  { %66 = vmatpush.msra.mxu0 %v43_v1  ;;  %131 = vmatpush.msra.mxu1 %v110_v24  ;;  %v241_v32 = vld [vmem:[#allocation5 + $0x38] ss:$0 sm:$0xff]  ;;  %v177_v54 = vld [vmem:[#allocation5 + $0x50] sm:$0xff]  ;;  %v176_v55 = vld [vmem:[#allocation5 + $0x48] sm:$0xff]  ;;  %s214_s23 = sshll.u32 %s340_s22, 4  ;;  %vm207_vm10 = vcmask 64512   ;;  %s215_s23 = int_to_ptr.vmem [resolvable:$true] %s214_s23 }
   0xf   :  { %227 = vmatmul.msk.f32.vlgmr.msra.gmra.mxu0 %vm47_vm0, %v42_v2  ;;  %v178_v53 = vld [vmem:[#allocation5 + $0x58] sm:$0xff]  ;;  %v175_v56 = vld [vmem:[#allocation5 + $0x40] sm:$0xff] }
  0x10   :  { %132 = vmatpush.msra.mxu1 %v109_v25  ;;  %197 = vmatpush.msra.mxu2 %v178_v53  ;;  %v242_v61 = vld [vmem:[#allocation5 + $0x60] ss:$0 sm:$0xff] }
  0x12   :  { %133 = vmatpush.msra.mxu1 %v108_v26  ;;  %198 = vmatpush.msra.mxu2 %v177_v54 }
  0x14   :  { %134 = vmatpush.msra.mxu1 %v107_v27  ;;  %199 = vmatpush.msra.mxu2 %v176_v55 }
  0x16   :  { %200 = vmatpush.msra.mxu2 %v175_v56 }
  0x8c   :  { %v68_v4 = vpop.f32.mrf.mxu0 }
  0x8d   :  { %v69_v5 = vadd.f32 %v240_v3, %v68_v4 }
  0x8f   :  { %91 = vrot.lane.b32.xlu0 %v69_v5, %s337_s0  ;;  %v228_v6 = vmul.f32 -1.442695, %v69_v5 }
  0x91   :  { %243 = vpow2.f32 %v228_v6 }
  0x97   :  { %v244_v7 = vpop.eup %243 }
  0x98   :  { %v74_v8 = vadd.f32 1.0, %v244_v7 }
  0x9a   :  { %245 = vrcp.f32 %v74_v8  ;;  %v86_v14 = vand.u32 2147483648, %v74_v8  ;;  %vm80_vm2 = vweird.f32 %v74_v8  ;;  %v84_v15 = vand.u32 2147483647, %v74_v8 }
  0x9c   :  { %v87_v17 = vor.u32 1.1754944e-38, %v86_v14  ;;  %vm85_vm4 = vcmp.eq.f32.partialorder %v84_v15, 8.507059e+37 }
  0xa0   :  { %v246_v9 = vpop.eup %245 }
  0xa1   :  { %v76_v10 = vmul.f32 %v246_v9, %v74_v8  ;;  %vm81_vm1 = vweird.f32 %v246_v9 }
  0xa2   :  { %vm82_vm3 = vmor %vm80_vm2, %vm81_vm1 }
  0xa3   :  { %v77_v11 = vsub.f32 1.0, %v76_v10 }
  0xa5   :  { %v78_v12 = vmul.f32 %v246_v9, %v77_v11 }
  0xa7   :  { %v79_v13 = vadd.f32 %v246_v9, %v78_v12 }
  0xa9   :  { %v83_v16 = vsel %vm82_vm3, %v246_v9, %v79_v13 }
  0xaa   :  { %v88_v19 = vsel %vm85_vm4, %v87_v17, %v83_v16 }
  0xab   :  { %v101_v28 = vsub.f32 1.0, %v88_v19 }
 0x101   :  { %v92_v18 = vpop.permute.xlu0 %91 }
 0x102   :  { %v94_v20 = vmul.f32 %v92_v18, %v88_v19 }
 0x104   :  { %96 = vrot.lane.b32.xlu0 %v94_v20, %s338_s1 }
 0x176   :  { %v97_v21 = vpop.permute.xlu0 %96 }
 0x177   :  { %v99_v22 = vadd.f32 %v97_v21, %v69_v5 }
 0x179   :  { %247 = vtanh.f32 %v99_v22 }
 0x17f   :  { %v248_v23 = vpop.eup %247 }
 0x180   :  { %103 = vrot.lane.b32.xlu1 %v248_v23, %s339_s21 }
 0x1f2   :  { %v104_v29 = vpop.permute.xlu1 %103 }
 0x1f3   :  { %v106_v30 = vmul.f32 %v104_v29, %v101_v28 }
 0x1f5   :  { %114 = vrot.lane.b32.xlu1 %v106_v30, %s339_s21 }
 0x267   :  { %v115_v31 = vpop.permute.xlu1 %114 }
 0x268   :  { %229 = vmatmul.msk.f32.vlgmr.msra.gmra.mxu1 %vm116_vm5, %v115_v31 }
 0x2e5   :  { %v136_v33 = vpop.f32.mrf.mxu1 }
 0x2e6   :  { %v137_v34 = vadd.f32 %v241_v32, %v136_v33 }
 0x2e8   :  { %159 = vrot.lane.b32.xlu2 %v137_v34, %s337_s0  ;;  %v230_v35 = vmul.f32 -1.442695, %v137_v34 }
 0x2ea   :  { %249 = vpow2.f32 %v230_v35 }
 0x2f0   :  { %v250_v36 = vpop.eup %249 }
 0x2f1   :  { %v142_v37 = vadd.f32 1.0, %v250_v36 }
 0x2f3   :  { %251 = vrcp.f32 %v142_v37  ;;  %v154_v43 = vand.u32 2147483648, %v142_v37  ;;  %vm148_vm7 = vweird.f32 %v142_v37  ;;  %v152_v44 = vand.u32 2147483647, %v142_v37 }
 0x2f5   :  { %v155_v46 = vor.u32 1.1754944e-38, %v154_v43  ;;  %vm153_vm9 = vcmp.eq.f32.partialorder %v152_v44, 8.507059e+37 }
 0x2f9   :  { %v252_v38 = vpop.eup %251 }
 0x2fa   :  { %v144_v39 = vmul.f32 %v252_v38, %v142_v37  ;;  %vm149_vm6 = vweird.f32 %v252_v38 }
 0x2fb   :  { %vm150_vm8 = vmor %vm148_vm7, %vm149_vm6 }
 0x2fc   :  { %v145_v40 = vsub.f32 1.0, %v144_v39 }
 0x2fe   :  { %v146_v41 = vmul.f32 %v252_v38, %v145_v40 }
 0x300   :  { %v147_v42 = vadd.f32 %v252_v38, %v146_v41 }
 0x302   :  { %v151_v45 = vsel %vm150_vm8, %v252_v38, %v147_v42 }
 0x303   :  { %v156_v48 = vsel %vm153_vm9, %v155_v46, %v151_v45 }
 0x304   :  { %v169_v57 = vsub.f32 1.0, %v156_v48 }
 0x342   :  { %v160_v47 = vpop.permute.xlu2 %159 }
 0x343   :  { %v162_v49 = vmul.f32 %v160_v47, %v156_v48 }
 0x345   :  { %164 = vrot.lane.b32.xlu2 %v162_v49, %s338_s1 }
 0x39f   :  { %v165_v50 = vpop.permute.xlu2 %164 }
 0x3a0   :  { %v167_v51 = vadd.f32 %v165_v50, %v137_v34 }
 0x3a2   :  { %253 = vtanh.f32 %v167_v51 }
 0x3a8   :  { %v254_v52 = vpop.eup %253 }
 0x3a9   :  { %171 = vrot.lane.b32.xlu0 %v254_v52, %s339_s21 }
 0x41b   :  { %v172_v58 = vpop.permute.xlu0 %171 }
 0x41c   :  { %v174_v59 = vmul.f32 %v172_v58, %v169_v57 }
 0x41e   :  { %181 = vrot.lane.b32.xlu1 %v174_v59, %s339_s21 }
 0x490   :  { %v182_v60 = vpop.permute.xlu1 %181 }
 0x491   :  { %231 = vmatmul.msk.f32.vlgmr.msra.gmra.mxu2 %vm116_vm5, %v182_v60 }
 0x514   :  { %v202_v62 = vpop.f32.mrf.mxu2 }
 0x515   :  { %v206_v63 = vadd.f32 %v242_v61, %v202_v62 }
 0x517   :  { %208 = vst.msk [vmem:[#allocation7] sm:$0xff] %vm207_vm10, %v206_v63 }
 0x518   :  { %219 = dma.vmem_to_hbm [thread:$0]  %s215_s23, 128, %s217_s26, [#allocation4]  }
 0x519   :  { %331 = dma.done.wait [#allocation4], 128  }
 0x51a   :  { %332 = vsyncadd [#allocation4], 4294967168 }
 0x51b   :  { %224 = vsyncpa [#allocation3], 1 }
 0x51c   :  { %225 = vsyncpa [#allocation6], 1 }
 0x51d   :  { %226 = vsyncpa [#allocation4], 1 }

</bundles_post_ra>
